<compile_context>
chip_gen: v7x
topology: tpu7x:2x2x1
jax: 0.10.0
libtpu: 0.0.40
codegen_flags: <defaults>
</compile_context>

<pallas_src>
import math

import jax
import jax.numpy as jnp
from jax.experimental import pallas as pl
from jax.experimental.pallas import tpu as pltpu


# ---------------------------------------------------------------------------
# Kernels
# ---------------------------------------------------------------------------

def _disc_kernel_single_k(x_ref, w1_ref, b1_ref, w2_ref, b2_ref, o_ref):
    # x_ref:  [TN, D]       f32 tile of the flattened image batch
    # w1_ref: [D, HIDDEN]   bf16 (full K, single DMA per N tile)
    # b1_ref: [1, HIDDEN]   f32
    # w2_ref: [1, HIDDEN]   f32 (output head as a row vector)
    # b2_ref: [1, 1]        f32 in SMEM
    # o_ref:  [1, TN]       f32 lane-dense logit slab for this N tile
    x_bf16 = x_ref[...].astype(jnp.bfloat16)                    # VPU cast
    h = jnp.dot(x_bf16, w1_ref[...],
                preferred_element_type=jnp.float32)             # MXU
    h = h + b1_ref[...]
    h = jnp.maximum(h, 0.2 * h)                                 # LeakyReLU(0.2)
    # Output head on the VPU: multiply + lane reduce (avoids [H,1] MXU op).
    row = jnp.sum(h * w2_ref[...], axis=-1) + b2_ref[0, 0]      # [TN]
    o_ref[...] = row.reshape(1, -1).astype(o_ref.dtype)         # [1, TN]


def _disc_kernel_k_tiled(x_ref, w1_ref, b1_ref, w2_ref, b2_ref, o_ref, acc_ref):
    # x_ref:  [TN, TK]      f32 tile
    # w1_ref: [TK, HIDDEN]  bf16 K-tile of the first-layer weight
    # acc_ref:[TN, HIDDEN]  f32 VMEM accumulator
    k = pl.program_id(1)

    @pl.when(k == 0)
    def _init():
        acc_ref[...] = jnp.zeros_like(acc_ref)

    acc_ref[...] += jnp.dot(x_ref[...].astype(jnp.bfloat16), w1_ref[...],
                            preferred_element_type=jnp.float32)

    @pl.when(k == pl.num_programs(1) - 1)
    def _finalize():
        h = acc_ref[...] + b1_ref[...]
        h = jnp.maximum(h, 0.2 * h)
        row = jnp.sum(h * w2_ref[...], axis=-1) + b2_ref[0, 0]
        o_ref[...] = row.reshape(1, -1).astype(o_ref.dtype)


# ---------------------------------------------------------------------------
# Tile selection
# ---------------------------------------------------------------------------

_X_TILE_BYTES_BUDGET = 4 * 1024 * 1024   # per buffer; Pallas double-buffers


def _select_k_tile(d):
    """Largest multiple of 128 (<= 2048) dividing d; None if 128 does not divide d."""
    if d % 128 != 0:
        return None
    cand = (min(2048, d) // 128) * 128
    while cand >= 128:
        if d % cand == 0:
            return cand
        cand -= 128
    return 128   # unreachable: 128 | d


def _select_n_tile(n, tk):
    if n <= 128:
        return n                         # single full-N block (block == full dim)
    # Keep the f32 x tile under the per-buffer budget, cap at 512, and aim for
    # >= 2 N tiles so ("parallel", ...) can shard across both v7x TensorCores.
    budget_rows = max(128, (_X_TILE_BYTES_BUDGET // (tk * 4) // 128) * 128)
    half = pl.cdiv(pl.cdiv(n, 2), 128) * 128
    return int(max(128, min(512, half, budget_rows)))


# ---------------------------------------------------------------------------
# Wrapper
# ---------------------------------------------------------------------------

def prepare_discriminator_params(w1, b1, w2, b2):
    """One-time parameter prep (kept OUT of the per-call hot path)."""
    hidden = w1.shape[1]
    return (
        w1.astype(jnp.bfloat16),                       # big weight stream in bf16
        b1.reshape(1, hidden).astype(jnp.float32),
        w2.reshape(1, hidden).astype(jnp.float32),     # output head as row vector
        b2.reshape(1, 1).astype(jnp.float32),
    )


def discriminator_forward(x_nchw, params):
    """x_nchw: [N,C,H,W] f32; params from prepare_discriminator_params."""
    w1_p, b1_r, w2_r, b2_r = params
    n = x_nchw.shape[0]
    d = math.prod(x_nchw.shape[1:])
    hidden = w1_p.shape[1]

    x_flat = x_nchw.reshape(n, d)        # row-major flatten (torch .view); no copy

    tk = _select_k_tile(d)
    if tk is None:
        if d <= 4096:
            tk = d                       # single full-K block (block == full dim)
        else:
            # Rare: large, non-128-aligned D -> one-time zero pad of K
            # (zero padding keeps the matmul exact).
            d_pad = pl.cdiv(d, 128) * 128
            x_flat = jnp.pad(x_flat, ((0, 0), (0, d_pad - d)))
            w1_p = jnp.pad(w1_p, ((0, d_pad - d), (0, 0)))
            d = d_pad
            tk = _select_k_tile(d)

    tn = _select_n_tile(n, tk)
    n_tiles = pl.cdiv(n, tn)
    k_tiles = d // tk
    n_out = n_tiles * tn                 # lane-dense output slab width

    if k_tiles == 1:
        # Collapsed K axis: one MXU dot per N tile, no accumulator scratch.
        out = pl.pallas_call(
            _disc_kernel_single_k,
            out_shape=jax.ShapeDtypeStruct((1, n_out), jnp.float32),
            grid_spec=pltpu.PrefetchScalarGridSpec(
                num_scalar_prefetch=0,
                grid=(n_tiles,),
                in_specs=[
                    pl.BlockSpec((tn, d), lambda i: (i, 0)),        # x tile (f32)
                    pl.BlockSpec((d, hidden), lambda i: (0, 0)),    # w1 resident
                    pl.BlockSpec((1, hidden), lambda i: (0, 0)),    # b1
                    pl.BlockSpec((1, hidden), lambda i: (0, 0)),    # w2 row
                    pl.BlockSpec(memory_space=pltpu.MemorySpace.SMEM),  # b2
                ],
                out_specs=pl.BlockSpec((1, tn), lambda i: (0, i)),  # lane-dense
            ),
            compiler_params=pltpu.CompilerParams(
                dimension_semantics=("parallel",),
            ),
        )(x_flat, w1_p, b1_r, w2_r, b2_r)
    else:
        out = pl.pallas_call(
            _disc_kernel_k_tiled,
            out_shape=jax.ShapeDtypeStruct((1, n_out), jnp.float32),
            grid_spec=pltpu.PrefetchScalarGridSpec(
                num_scalar_prefetch=0,
                grid=(n_tiles, k_tiles),                            # K last
                in_specs=[
                    pl.BlockSpec((tn, tk), lambda i, k: (i, k)),    # x tile (f32)
                    pl.BlockSpec((tk, hidden), lambda i, k: (k, 0)),  # w1 K-tiled
                    pl.BlockSpec((1, hidden), lambda i, k: (0, 0)),   # b1
                    pl.BlockSpec((1, hidden), lambda i, k: (0, 0)),   # w2 row
                    pl.BlockSpec(memory_space=pltpu.MemorySpace.SMEM),  # b2
                ],
                out_specs=pl.BlockSpec((1, tn), lambda i, k: (0, i)),
                scratch_shapes=[pltpu.VMEM((tn, hidden), jnp.float32)],
            ),
            compiler_params=pltpu.CompilerParams(
                dimension_semantics=("parallel", "arbitrary"),
            ),
        )(x_flat, w1_p, b1_r, w2_r, b2_r)

    # Layout plumbing only: (1, n_out) lane-dense slab -> (N, 1) logits.
    return out[0, :n].reshape(n, 1)


def _ref_forward(x_nchw, w1, b1, w2, b2):
    x = x_nchw.reshape(x_nchw.shape[0], -1)
    h = x @ w1 + b1.reshape(1, -1)
    h = jnp.where(h > 0, h, 0.2 * h)
    return h @ w2 + b2.reshape(1, 1)


if __name__ == "__main__":
    key = jax.random.PRNGKey(0)
    k_x, k_w1, k_b1, k_w2, k_b2 = jax.random.split(key, 5)

    # Small shapes consistent with an image discriminator input.
    N, C, H, W = 2, 4, 16, 16
    D = C * H * W          # 1024
    HIDDEN = 32

    x = jax.random.normal(k_x, (N, C, H, W), dtype=jnp.float32)

    # Deterministic synthetic parameters (no checkpoint load).
    w1 = jax.random.normal(k_w1, (D, HIDDEN), dtype=jnp.float32) * 0.02
    b1 = jax.random.normal(k_b1, (1, HIDDEN), dtype=jnp.float32) * 0.01
    w2 = jax.random.normal(k_w2, (HIDDEN, 1), dtype=jnp.float32) * 0.02
    b2 = jax.random.normal(k_b2, (1, 1), dtype=jnp.float32) * 0.01

    params = prepare_discriminator_params(w1, b1, w2, b2)   # one-time prep
    fwd = jax.jit(discriminator_forward)

    out = jax.block_until_ready(fwd(x, params))

    ref = _ref_forward(x, w1, b1, w2, b2)
    assert out.shape == (N, 1)
    # bf16 MXU operands (f32 accumulation) -> slightly loosened tolerance.
    assert jnp.allclose(out, ref, atol=1e-2, rtol=1e-2), (out, ref)

    print("KERNEL_OK")
</pallas_src>

<mosaic_0001>
module attributes {stable_mosaic.version = 11 : i64} {
  func.func @_disc_kernel_single_k(%arg0: i32, %arg1: memref<2x1024xf32, #tpu.memory_space<vmem>>, %arg2: memref<1024x32xbf16, #tpu.memory_space<vmem>>, %arg3: memref<1x32xf32, #tpu.memory_space<vmem>>, %arg4: memref<1x32xf32, #tpu.memory_space<vmem>>, %arg5: memref<1x1xf32, #tpu.memory_space<smem>>, %arg6: memref<1x2xf32, #tpu.memory_space<vmem>>) attributes {dimension_semantics = [#tpu.dimension_semantics<parallel>], iteration_bounds = array<i64: 1>, scalar_prefetch = 0 : i64, scratch_operands = 0 : i64, tpu.core_type = #tpu.core_type<tc>, window_params = [{transform_indices = @transform_0, window_bounds = array<i64: 2, 1024>}, {pipeline_mode = #tpu.pipeline_mode<synchronous>, transform_indices = @transform_1, window_bounds = array<i64: 1024, 32>}, {pipeline_mode = #tpu.pipeline_mode<synchronous>, transform_indices = @transform_2, window_bounds = array<i64: 1, 32>}, {pipeline_mode = #tpu.pipeline_mode<synchronous>, transform_indices = @transform_3, window_bounds = array<i64: 1, 32>}, {transform_indices = @transform_4, window_bounds = array<i64: 1, 1>}, {transform_indices = @transform_5, window_bounds = array<i64: 1, 2>}]} {
    %c0 = arith.constant 0 : index
    %c0_0 = arith.constant 0 : index
    %0 = vector.load %arg1[%c0, %c0_0] : memref<2x1024xf32, #tpu.memory_space<vmem>>, vector<2x1024xf32>
    %1 = arith.truncf %0 : vector<2x1024xf32> to vector<2x1024xbf16>
    %c0_1 = arith.constant 0 : index
    %c0_2 = arith.constant 0 : index
    %2 = vector.load %arg2[%c0_1, %c0_2] : memref<1024x32xbf16, #tpu.memory_space<vmem>>, vector<1024x32xbf16>
    %cst = arith.constant dense<0.000000e+00> : vector<2x32xf32>
    %3 = tpu.matmul %1, %2, %cst {dimension_numbers = #tpu.dot_dimension_numbers<[1], [0], [0], [1], [0, 0, 1, 1], [], []>} : vector<2x1024xbf16>, vector<1024x32xbf16>, vector<2x32xf32> -> vector<2x32xf32>
    %c0_3 = arith.constant 0 : index
    %c0_4 = arith.constant 0 : index
    %4 = vector.load %arg3[%c0_3, %c0_4] : memref<1x32xf32, #tpu.memory_space<vmem>>, vector<1x32xf32>
    %5 = vector.broadcast %4 : vector<1x32xf32> to vector<2x32xf32>
    %6 = arith.addf %3, %5 : vector<2x32xf32>
    %cst_5 = arith.constant 2.000000e-01 : f32
    %7 = vector.broadcast %cst_5 : f32 to vector<2x32xf32>
    %8 = arith.mulf %7, %6 : vector<2x32xf32>
    %9 = arith.maximumf %6, %8 : vector<2x32xf32>
    %c0_6 = arith.constant 0 : index
    %c0_7 = arith.constant 0 : index
    %10 = vector.load %arg4[%c0_6, %c0_7] : memref<1x32xf32, #tpu.memory_space<vmem>>, vector<1x32xf32>
    %11 = vector.broadcast %10 : vector<1x32xf32> to vector<2x32xf32>
    %12 = arith.mulf %9, %11 : vector<2x32xf32>
    %cst_8 = arith.constant dense<0.000000e+00> : vector<2xf32>
    %13 = vector.multi_reduction <add>, %12, %cst_8 [1] : vector<2x32xf32> to vector<2xf32>
    %c0_9 = arith.constant 0 : index
    %c0_10 = arith.constant 0 : index
    %14 = memref.load %arg5[%c0_9, %c0_10] : memref<1x1xf32, #tpu.memory_space<smem>>
    %15 = vector.broadcast %14 : f32 to vector<2xf32>
    %16 = arith.addf %13, %15 : vector<2xf32>
    %17 = vector.shape_cast %16 : vector<2xf32> to vector<1x2xf32>
    %c0_11 = arith.constant 0 : index
    %c0_12 = arith.constant 0 : index
    %18 = vector.load %arg6[%c0_11, %c0_12] : memref<1x2xf32, #tpu.memory_space<vmem>>, vector<1x2xf32>
    tpu.vector_store %arg6[%c0_11, %c0_12], %17 {strides = array<i32>} : memref<1x2xf32, #tpu.memory_space<vmem>>, vector<1x2xf32>,
    return
  }
  func.func @transform_0(%arg0: i32) -> (i32, i32) {
    %c0_i32 = arith.constant 0 : i32
    %c0_i32_0 = arith.constant 0 : i32
    return %arg0, %c0_i32 : i32, i32
  }
  func.func @transform_1(%arg0: i32) -> (i32, i32) {
    %c0_i32 = arith.constant 0 : i32
    %c0_i32_0 = arith.constant 0 : i32
    %c0_i32_1 = arith.constant 0 : i32
    return %c0_i32, %c0_i32_0 : i32, i32
  }
  func.func @transform_2(%arg0: i32) -> (i32, i32) {
    %c0_i32 = arith.constant 0 : i32
    %c0_i32_0 = arith.constant 0 : i32
    %c0_i32_1 = arith.constant 0 : i32
    return %c0_i32, %c0_i32_0 : i32, i32
  }
  func.func @transform_3(%arg0: i32) -> (i32, i32) {
    %c0_i32 = arith.constant 0 : i32
    %c0_i32_0 = arith.constant 0 : i32
    %c0_i32_1 = arith.constant 0 : i32
    return %c0_i32, %c0_i32_0 : i32, i32
  }
  func.func @transform_4(%arg0: i32) -> (i32, i32) {
    %c0_i32 = arith.constant 0 : i32
    %c0_i32_0 = arith.constant 0 : i32
    %c0_i32_1 = arith.constant 0 : i32
    return %c0_i32, %c0_i32_0 : i32, i32
  }
  func.func @transform_5(%arg0: i32) -> (i32, i32) {
    %c0_i32 = arith.constant 0 : i32
    %c0_i32_0 = arith.constant 0 : i32
    return %c0_i32, %arg0 : i32, i32
  }
}

</mosaic_0001>

<bundles_post_ra>
// kernel: discriminator_forward.1
= control target key start
LH: loop header
LB: loop body
LE: loop exit
PB: predicated region body
PF: predicated region fallthrough
CT: control target
= control target key end

     0   :  { %v31_v28 = vlaneseq  ;;  %v1043_v36 = vmov 1983009808   ;;  %s1306_s0 = inlined_call_operand.vmem [shape: f32[2,1024], index: 0, kind: input, shape index: {}]   ;;  %s1307_s1 = inlined_call_operand.vmem [shape: bf16[1024,32], index: 1, kind: input, shape index: {}]   ;;  %s1308_s2 = inlined_call_operand.vmem [shape: f32[1,32], index: 2, kind: input, shape index: {}]   ;;  %s1309_s3 = inlined_call_operand.vmem [shape: f32[1,32], index: 3, kind: input, shape index: {}]   ;;  %s1310_s4 = inlined_call_operand.<no memory space> [shape: f32[1,1], index: 4, kind: input, shape index: {}]   ;;  %s1311_s5 = inlined_call_operand.hbm [shape: f32[1,2], index: 5, kind: output, shape index: {}]  }
   0x1   :  { %v953_v0 = vld [vmem:[%s1307_s1 + $0x40] sm:$0xff]   ;;  %v957_v4 = vld [vmem:[%s1307_s1 + $0x48] sm:$0xff]   ;;  %v961_v8 = vld [vmem:[%s1307_s1 + $0x50] sm:$0xff]   ;;  %v29_v37 = vunpack.c.l.s4 %v1043_v36 }
   0x2   :  { %v954_v1 = vld [vmem:[%s1307_s1 + $0xc0] sm:$0xff]   ;;  %863 = vmatprep.subr.bf16.mxu0 %v953_v0  ;;  %v958_v5 = vld [vmem:[%s1307_s1 + $0xc8] sm:$0xff]   ;;  %v962_v9 = vld [vmem:[%s1307_s1 + $0xd0] sm:$0xff]   ;;  %v1172_v33 = vshrl.u32 %v31_v28, 7 }
   0x3   :  { %v955_v2 = vld [vmem:[%s1307_s1] sm:$0xff]   ;;  %885 = vmatprep.subr.bf16.mxu1 %v954_v1  ;;  %v959_v6 = vld [vmem:[%s1307_s1 + $0x8] sm:$0xff]   ;;  %v963_v10 = vld [vmem:[%s1307_s1 + $0x10] sm:$0xff]   ;;  %v30_v39 = vunpack.c.0.s8 %v29_v37 }
   0x4   :  { %v956_v3 = vld [vmem:[%s1307_s1 + $0x80] sm:$0xff]   ;;  %864 = vmatpush3.bf16.msra.mxu0 %v955_v2  ;;  %v960_v7 = vld [vmem:[%s1307_s1 + $0x88] sm:$0xff]   ;;  %v964_v11 = vld [vmem:[%s1307_s1 + $0x90] sm:$0xff]  }
   0x5   :  { %886 = vmatpush3.bf16.msra.mxu1 %v956_v3  ;;  %865 = vmatprep.subr.bf16.mxu0 %v957_v4  ;;  %v965_v12 = vld [vmem:[%s1307_s1 + $0x58] sm:$0xff]   ;;  %v969_v16 = vld [vmem:[%s1307_s1 + $0x60] sm:$0xff]   ;;  %v973_v20 = vld [vmem:[%s1307_s1 + $0x68] sm:$0xff]   ;;  %v1184_v41 = vsub.s32 %v30_v39, %v1172_v33 }
   0x6   :  { %887 = vmatprep.subr.bf16.mxu1 %v958_v5  ;;  %v966_v13 = vld [vmem:[%s1307_s1 + $0xd8] sm:$0xff]   ;;  %v970_v17 = vld [vmem:[%s1307_s1 + $0xe0] sm:$0xff]   ;;  %v974_v21 = vld [vmem:[%s1307_s1 + $0xe8] sm:$0xff]  }
   0x7   :  { %v967_v14 = vld [vmem:[%s1307_s1 + $0x18] sm:$0xff]   ;;  %v971_v18 = vld [vmem:[%s1307_s1 + $0x20] sm:$0xff]   ;;  %v975_v22 = vld [vmem:[%s1307_s1 + $0x28] sm:$0xff]  }
   0x8   :  { %866 = vmatpush3.bf16.msra.mxu0 %v959_v6  ;;  %v968_v15 = vld [vmem:[%s1307_s1 + $0x98] sm:$0xff]   ;;  %v972_v19 = vld [vmem:[%s1307_s1 + $0xa0] sm:$0xff]   ;;  %v976_v23 = vld [vmem:[%s1307_s1 + $0xa8] sm:$0xff]  }
   0x9   :  { %888 = vmatpush3.bf16.msra.mxu1 %v960_v7  ;;  %867 = vmatprep.subr.bf16.mxu0 %v961_v8  ;;  %v977_v24 = vld [vmem:[%s1307_s1 + $0x70] sm:$0xff]   ;;  %v981_v29 = vld [vmem:[%s1307_s1 + $0x78] sm:$0xff]   ;;  %v23_v34 = vld [vmem:[%s1306_s0] sm:$0xff] }
   0xa   :  { %889 = vmatprep.subr.bf16.mxu1 %v962_v9  ;;  %v978_v25 = vld [vmem:[%s1307_s1 + $0xf0] sm:$0xff]   ;;  %v982_v30 = vld [vmem:[%s1307_s1 + $0xf8] sm:$0xff]   ;;  %v986_v35 = vld [vmem:[%s1307_s1 + $0x140] sm:$0xff]   ;;  %v27_v40 = vcombine.high %v23_v34, %v23_v34  ;;  %v34_v42 = vrot.slane %v23_v34, %v1184_v41 }
   0xb   :  { %v979_v26 = vld [vmem:[%s1307_s1 + $0x30] sm:$0xff]   ;;  %v983_v31 = vld [vmem:[%s1307_s1 + $0x38] sm:$0xff]   ;;  %v987_v38 = vld [vmem:[%s1307_s1 + $0x1c0] sm:$0xff]  }
   0xc   :  { %868 = vmatpush3.bf16.msra.mxu0 %v963_v10  ;;  %v980_v27 = vld [vmem:[%s1307_s1 + $0xb0] sm:$0xff]   ;;  %v984_v32 = vld [vmem:[%s1307_s1 + $0xb8] sm:$0xff]   ;;  %v41_v43 = vrot.slane %v27_v40, %v1184_v41  ;;  %v42_v44 = vcombine.high %v34_v42, %v34_v42  ;;  %v988_v46 = vld [vmem:[%s1307_s1 + $0x100] sm:$0xff]   ;;  %v69_v47 = vpack.c.bf16 %v34_v42, %v34_v42 }
   0xd   :  { %890 = vmatpush3.bf16.msra.mxu1 %v964_v11  ;;  %869 = vmatprep.subr.bf16.mxu0 %v965_v12  ;;  %v989_v49 = vld [vmem:[%s1307_s1 + $0x180] sm:$0xff]   ;;  %v990_v52 = vld [vmem:[%s1307_s1 + $0x148] sm:$0xff]   ;;  %v994_v56 = vld [vmem:[%s1307_s1 + $0x150] sm:$0xff]  }
   0xe   :  { %891 = vmatprep.subr.bf16.mxu1 %v966_v13  ;;  %v43_v45 = vcombine.high %v41_v43, %v41_v43  ;;  %v71_v48 = vpack.c.bf16 %v41_v43, %v41_v43  ;;  %v70_v50 = vpack.c.bf16 %v42_v44, %v42_v44  ;;  %v991_v53 = vld [vmem:[%s1307_s1 + $0x1c8] sm:$0xff]   ;;  %v995_v57 = vld [vmem:[%s1307_s1 + $0x1d0] sm:$0xff]   ;;  %v998_v60 = vld [vmem:[%s1307_s1 + $0x158] sm:$0xff]  }
   0xf   :  { %v992_v54 = vld [vmem:[%s1307_s1 + $0x108] sm:$0xff]   ;;  %v996_v58 = vld [vmem:[%s1307_s1 + $0x110] sm:$0xff]   ;;  %v999_v61 = vld [vmem:[%s1307_s1 + $0x1d8] sm:$0xff]  }
  0x10   :  { %870 = vmatpush3.bf16.msra.mxu0 %v967_v14  ;;  %v72_v51 = vpack.c.bf16 %v43_v45, %v43_v45  ;;  %628 = vmatprep.mubr.bf16.mxu0 %v70_v50  ;;  %v993_v55 = vld [vmem:[%s1307_s1 + $0x188] sm:$0xff]   ;;  %v997_v59 = vld [vmem:[%s1307_s1 + $0x190] sm:$0xff]   ;;  %v1000_v62 = vld [vmem:[%s1307_s1 + $0x118] sm:$0xff]  }
  0x11   :  { %892 = vmatpush3.bf16.msra.mxu1 %v968_v15  ;;  %871 = vmatprep.subr.bf16.mxu0 %v969_v16  ;;  %v1001_v63 = vld [vmem:[%s1307_s1 + $0x198] sm:$0xff]   ;;  %v1002_v0 = vld [vmem:[%s1307_s1 + $0x160] sm:$0xff]   ;;  %v1006_v4 = vld [vmem:[%s1307_s1 + $0x168] sm:$0xff]  }
  0x12   :  { %893 = vmatprep.subr.bf16.mxu1 %v970_v17  ;;  %668 = vmatprep.mubr.bf16.mxu1 %v72_v51  ;;  %v1003_v1 = vld [vmem:[%s1307_s1 + $0x1e0] sm:$0xff]   ;;  %v1007_v5 = vld [vmem:[%s1307_s1 + $0x1e8] sm:$0xff]   ;;  %v1010_v8 = vld [vmem:[%s1307_s1 + $0x170] sm:$0xff]  }
  0x13   :  { %v1004_v2 = vld [vmem:[%s1307_s1 + $0x120] sm:$0xff]   ;;  %v1008_v6 = vld [vmem:[%s1307_s1 + $0x128] sm:$0xff]   ;;  %v1011_v9 = vld [vmem:[%s1307_s1 + $0x1f0] sm:$0xff]  }
  0x14   :  { %872 = vmatpush3.bf16.msra.mxu0 %v971_v18  ;;  %v1005_v3 = vld [vmem:[%s1307_s1 + $0x1a0] sm:$0xff]   ;;  %v1009_v7 = vld [vmem:[%s1307_s1 + $0x1a8] sm:$0xff]  }
  0x15   :  { %894 = vmatpush3.bf16.msra.mxu1 %v972_v19  ;;  %873 = vmatprep.subr.bf16.mxu0 %v973_v20  ;;  %v24_v10 = vld [vmem:[%s1306_s0 + $0x8] sm:$0xff] }
  0x16   :  { %895 = vmatprep.subr.bf16.mxu1 %v974_v21 }
  0x18   :  { %874 = vmatpush3.bf16.msra.mxu0 %v975_v22 }
  0x19   :  { %896 = vmatpush3.bf16.msra.mxu1 %v976_v23  ;;  %875 = vmatprep.subr.bf16.mxu0 %v977_v24 }
  0x1a   :  { %897 = vmatprep.subr.bf16.mxu1 %v978_v25 }
  0x1c   :  { %876 = vmatpush3.bf16.msra.mxu0 %v979_v26 }
  0x1d   :  { %898 = vmatpush3.bf16.msra.mxu1 %v980_v27  ;;  %877 = vmatprep.subr.bf16.mxu0 %v981_v29 }
  0x1e   :  { %899 = vmatprep.subr.bf16.mxu1 %v982_v30 }
  0x20   :  { %878 = vmatpush3.bf16.msra.mxu0 %v983_v31 }
  0x21   :  { %900 = vmatpush3.bf16.msra.mxu1 %v984_v32  ;;  %907 = vmatprep.subr.bf16.mxu0 %v986_v35 }
  0x22   :  { %929 = vmatprep.subr.bf16.mxu1 %v987_v38 }
  0x23   :  { %629 = vmatmul.mubr.bf16.vlgmr.msra.gmra.mrb[0].mxu0 %v69_v47 }
  0x24   :  { %669 = vmatmul.mubr.bf16.vlgmr.msra.gmra.mrb[0].mxu1 %v71_v48  ;;  %908 = vmatpush3.bf16.msra.mxu0 %v988_v46 }
  0x25   :  { %930 = vmatpush3.bf16.msra.mxu1 %v989_v49  ;;  %909 = vmatprep.subr.bf16.mxu0 %v990_v52 }
  0x26   :  { %931 = vmatprep.subr.bf16.mxu1 %v991_v53 }
  0x28   :  { %910 = vmatpush3.bf16.msra.mxu0 %v992_v54 }
  0x29   :  { %932 = vmatpush3.bf16.msra.mxu1 %v993_v55  ;;  %911 = vmatprep.subr.bf16.mxu0 %v994_v56 }
  0x2a   :  { %933 = vmatprep.subr.bf16.mxu1 %v995_v57 }
  0x2c   :  { %912 = vmatpush3.bf16.msra.mxu0 %v996_v58 }
  0x2d   :  { %934 = vmatpush3.bf16.msra.mxu1 %v997_v59  ;;  %913 = vmatprep.subr.bf16.mxu0 %v998_v60 }
  0x2e   :  { %935 = vmatprep.subr.bf16.mxu1 %v999_v61 }
  0x30   :  { %914 = vmatpush3.bf16.msra.mxu0 %v1000_v62 }
  0x31   :  { %936 = vmatpush3.bf16.msra.mxu1 %v1001_v63  ;;  %915 = vmatprep.subr.bf16.mxu0 %v1002_v0 }
  0x32   :  { %937 = vmatprep.subr.bf16.mxu1 %v1003_v1 }
  0x34   :  { %916 = vmatpush3.bf16.msra.mxu0 %v1004_v2 }
  0x35   :  { %938 = vmatpush3.bf16.msra.mxu1 %v1005_v3  ;;  %917 = vmatprep.subr.bf16.mxu0 %v1006_v4 }
  0x36   :  { %939 = vmatprep.subr.bf16.mxu1 %v1007_v5 }
  0x37   :  { %11 = vsyncpa [#allocation4], 0  ;;  %v51_v11 = vrot.slane %v24_v10, %v1184_v41  ;;  %v44_v12 = vcombine.high %v24_v10, %v24_v10  ;;  %v1012_v13 = vld [vmem:[%s1307_s1 + $0x130] sm:$0xff]   ;;  %v1014_v17 = vld [vmem:[%s1307_s1 + $0x178] sm:$0xff]   ;;  %vm766_vm0 = vcmask 254976   ;;  %v775_v58 = vand.u32 127, %v31_v28 }
  0x38   :  { %918 = vmatpush3.bf16.msra.mxu0 %v1008_v6  ;;  %v1013_v14 = vld [vmem:[%s1307_s1 + $0x1b0] sm:$0xff]   ;;  %v1015_v18 = vld [vmem:[%s1307_s1 + $0x1f8] sm:$0xff]   ;;  %v797_v29 = vld [vmem:[%s1308_s2] ss:$0 sm:$0xff]  ;;  %v771_v59 = vstv %s1310_s4  ;;  %s1044_s28 = smov [#allocation3]   ;;  %vm781_vm1 = vcmask 8192  }
  0x39   :  { %940 = vmatpush3.bf16.msra.mxu1 %v1009_v7  ;;  %v59_v15 = vcombine.high %v51_v11, %v51_v11  ;;  %v58_v16 = vrot.slane %v44_v12, %v1184_v41  ;;  %919 = vmatprep.subr.bf16.mxu0 %v1010_v8  ;;  %v1016_v21 = vld [vmem:[%s1307_s1 + $0x138] sm:$0xff]   ;;  %v73_v24 = vpack.c.bf16 %v51_v11, %v51_v11  ;;  %v862_v54 = vld [vmem:[%s1309_s3] ss:$0 sm:$0xff]  ;;  %s789_s29 = sshll.u32 %s1044_s28, 4  ;;  %s790_s29 = int_to_ptr.vmem [resolvable:$true] %s789_s29 }
  0x3a   :  { %941 = vmatprep.subr.bf16.mxu1 %v1011_v9  ;;  %v1017_v22 = vld [vmem:[%s1307_s1 + $0x1b8] sm:$0xff]   ;;  %v778_v60 = vsub.s32 %v775_v58, %v1172_v33  ;;  %s1019_s3 = scalar_lea.vmem %s790_s29, 16  ;;  %s1023_s30 = scalar_lea.vmem %s790_s29, 32 }
  0x3b   :  { %v74_v19 = vpack.c.bf16 %v59_v15, %v59_v15  ;;  %v60_v20 = vcombine.high %v58_v16, %v58_v16  ;;  %v75_v25 = vpack.c.bf16 %v58_v16, %v58_v16  ;;  %p1020_p0 = scmp.ne.s32.totalorder %s790_s29, %s1019_s3  ;;  %p1024_p1 = scmp.lt.s32.totalorder %s790_s29, %s790_s29 }
  0x3c   :  { %920 = vmatpush3.bf16.msra.mxu0 %v1012_v13  ;;  %p1025_p2 = scmp.lt.s32.totalorder %s1023_s30, %s1019_s3 }
  0x3d   :  { %942 = vmatpush3.bf16.msra.mxu1 %v1013_v14  ;;  %v76_v23 = vpack.c.bf16 %v60_v20, %v60_v20  ;;  %921 = vmatprep.subr.bf16.mxu0 %v1014_v17 }
  0x3e   :  { %943 = vmatprep.subr.bf16.mxu1 %v1015_v18  ;;  %708 = vmatprep.mubr.bf16.mxu0 %v74_v19  ;;  %p1026_p3 = por %p1025_p2, %p1024_p1 }
  0x3f   :  { %748 = vmatprep.mubr.bf16.mxu1 %v76_v23 }
  0x40   :  { %922 = vmatpush3.bf16.msra.mxu0 %v1016_v21  ;;  %p1027_p4 = pnand %p1026_p3, %p1020_p0 }
  0x41   :  { %944 = vmatpush3.bf16.msra.mxu1 %v1017_v22 }
  0x43   :  { %709 = vmatmul.mubr.bf16.vlgmr.msra.gmra.mrb[4].mxu0 %v73_v24 }
  0x44   :  { %749 = vmatmul.mubr.bf16.vlgmr.msra.gmra.mrb[4].mxu1 %v75_v25 }
  0xf6   :  { %v879_v26 = vpop.f32.mrb[0].mxu0 }
  0xf7   :  { %v901_v27 = vpop.f32.mrb[0].mxu1  ;;  %v880_v30 = vpop.f32.mrb[1].mxu0 }
  0xf8   :  { %v902_v31 = vpop.f32.mrb[1].mxu1  ;;  %v881_v32 = vadd.f32 %v880_v30, %v879_v26  ;;  %v882_v35 = vpop.f32.mrb[2].mxu0 }
  0xf9   :  { %v903_v34 = vadd.f32 %v902_v31, %v901_v27  ;;  %v904_v36 = vpop.f32.mrb[2].mxu1  ;;  %v883_v37 = vpop.f32.mrb[3].mxu0 }
  0xfa   :  { %v905_v38 = vpop.f32.mrb[3].mxu1  ;;  %v631_v39 = vadd.f32 %v881_v32, %v797_v29 }
  0xfc   :  { %v671_v40 = vadd.f32 %v903_v34, %v631_v39 }
 0x116   :  { %v923_v41 = vpop.f32.mrb[4].mxu0 }
 0x117   :  { %v945_v42 = vpop.f32.mrb[4].mxu1  ;;  %v924_v43 = vpop.f32.mrb[5].mxu0 }
 0x118   :  { %v946_v44 = vpop.f32.mrb[5].mxu1  ;;  %v925_v45 = vadd.f32 %v924_v43, %v923_v41  ;;  %v926_v47 = vpop.f32.mrb[6].mxu0 }
 0x119   :  { %v947_v46 = vadd.f32 %v946_v44, %v945_v42  ;;  %v948_v48 = vpop.f32.mrb[6].mxu1  ;;  %v927_v49 = vpop.f32.mrb[7].mxu0 }
 0x11a   :  { %v949_v50 = vpop.f32.mrb[7].mxu1  ;;  %v711_v51 = vadd.f32 %v925_v45, %v671_v40 }
 0x11c   :  { %v751_v52 = vadd.f32 %v947_v46, %v711_v51 }
 0x11e   :  { %v756_v53 = vmul.f32 0.2, %v751_v52 }
 0x120   :  { %v757_v55 = vmax.f32 %v751_v52, %v756_v53 }
 0x122   :  { %v765_v56 = vmul.f32 %v862_v54, %v757_v55 }
 0x124   :  { %v767_v57 = vsel %vm766_vm0, %v765_v56, 0.0 }
 0x125   :  { %768 = vadd.xlane.f32.xlu0 %v767_v57 }
 0x1b2   :  { %v769_v61 = vpop.xlane.xlu0 %768 }
 0x1b3   :  { %v772_v62 = vadd.f32 %v771_v59, %v769_v61 }
 0x1b5   :  { %v779_v63 = vrot.slane %v772_v62, %v778_v60 }
 0x1b7   :  { %782 = vst.msk [vmem:[#allocation3] sm:$0x1] %vm781_vm1, %v779_v63 }
 0x1b8   :  { %1030 = shalt.err (!%p1027_p4)
}
 0x1b9   :  { %s1031_s7 = scalar_lea.hbm %s1311_s5, 16 }
 0x1ba   :  { %p1032_p5 = scmp.ne.s32.totalorder %s1311_s5, %s1031_s7  ;;  %p1035_p6 = scmp.lt.u32.totalorder %s1031_s7, %s1311_s5 }
 0x1bc   :  { %p1037_p7 = pnand %p1035_p6, %p1032_p5 }
 0x1be   :  { %1040 = shalt.err (!%p1037_p7)
}
 0x1bf   :  { %792 = dma.vmem_to_hbm [thread:$0]  %s790_s29, 16, %s1311_s5, [#allocation4]  }
 0x1c0   :  { %1041 = dma.done.wait [#allocation4], 16  }
 0x1c1   :  { %1042 = vsyncadd [#allocation4], 4294967280 }
 0x1c2   :  { %796 = vsyncpa [#allocation4], 1 }

</bundles_post_ra>
